<compile_context>
chip_gen: v6e
topology: v6e:2x2x1
jax: 0.10.0
libtpu: 0.0.40
codegen_flags: <defaults>
</compile_context>

<pallas_src>
import jax
import jax.numpy as jnp
from jax.experimental import pallas as pl
from jax.experimental.pallas import tpu as pltpu

EPS = 1e-5


def fcrelu_kernel(x_ref, w_ref, gamma_ref, beta_ref, o_ref, acc_ref):
    # x_ref:     (N, tk)        input K-slab
    # w_ref:     (tn, tk)       Linear weight in PyTorch (out, in) layout
    # gamma_ref: (1, tn)        BatchNorm weight  (resident across K)
    # beta_ref:  (1, tn)        BatchNorm bias    (resident across K)
    # o_ref:     (N, tn)        output feature tile
    # acc_ref:   (N, tn) f32    VMEM accumulator across the K axis
    k = pl.program_id(1)

    @pl.when(k == 0)
    def _():
        acc_ref[...] = jnp.zeros_like(acc_ref)

    # MXU: contract x dim 1 against weight dim 1 -> (N, tn), f32 accumulate.
    acc_ref[...] += jax.lax.dot_general(
        x_ref[...],
        w_ref[...],
        dimension_numbers=(((1,), (1,)), ((), ())),
        preferred_element_type=jnp.float32,
    )

    @pl.when(k == pl.num_programs(1) - 1)
    def _():
        y = acc_ref[...]
        inv_n = 1.0 / y.shape[0]
        mean = jnp.sum(y, axis=0, keepdims=True) * inv_n
        centered = y - mean
        var = jnp.sum(centered * centered, axis=0, keepdims=True) * inv_n
        # Fold gamma into the normalization scale: one FMA-style epilogue.
        scale = gamma_ref[...] * jax.lax.rsqrt(var + EPS)   # rsqrt -> EUP
        out = centered * scale + beta_ref[...]
        o_ref[...] = jnp.maximum(out, 0.0).astype(o_ref.dtype)


def _round_up(a, m):
    return (a + m - 1) // m * m


def fc_relu(x, weight, bias, gamma, beta, *, tn=None, tk=None):
    """Fused Linear -> BatchNorm1d(train stats) -> ReLU.

    x:      (N, in_dim)
    weight: (out_dim, in_dim)   PyTorch nn.Linear layout (not transposed)
    bias:   (out_dim,)          unused (cancelled by BN mean subtraction)
    gamma:  (out_dim,)          BatchNorm1d weight
    beta:   (out_dim,)          BatchNorm1d bias
    """
    del bias  # exactly cancelled by the batch-mean subtraction in BatchNorm
    n, in_dim = x.shape
    out_dim, in_dim_w = weight.shape
    assert in_dim_w == in_dim

    # Lane-dense, MXU-friendly tiles. tn/tk are multiples of 128; bump tn to
    # 256 / tk to 512 for larger problems (re-derive against 64 MiB VMEM on
    # v7x: n*tk + tn*tk + n*tn, double-buffered, must fit the scoped limit).
    if tn is None:
        tn = min(256, _round_up(out_dim, 128))
    if tk is None:
        tk = min(512, _round_up(in_dim, 128))

    out_pad = _round_up(out_dim, tn)
    in_pad = _round_up(in_dim, tk)

    x_p = x if in_pad == in_dim else jnp.pad(x, ((0, 0), (0, in_pad - in_dim)))
    if out_pad != out_dim or in_pad != in_dim:
        w_p = jnp.pad(weight, ((0, out_pad - out_dim), (0, in_pad - in_dim)))
    else:
        w_p = weight
    g_p = jnp.pad(gamma, (0, out_pad - out_dim)).reshape(1, out_pad)
    b_p = jnp.pad(beta, (0, out_pad - out_dim)).reshape(1, out_pad)

    grid = (out_pad // tn, in_pad // tk)

    out_padded = pl.pallas_call(
        fcrelu_kernel,
        out_shape=jax.ShapeDtypeStruct((n, out_pad), x.dtype),
        grid_spec=pltpu.PrefetchScalarGridSpec(
            num_scalar_prefetch=0,
            grid=grid,
            in_specs=[
                pl.BlockSpec((n, tk), lambda j, k: (0, k)),    # x K-slab
                pl.BlockSpec((tn, tk), lambda j, k: (j, k)),   # weight tile
                pl.BlockSpec((1, tn), lambda j, k: (0, j)),    # gamma (K-resident)
                pl.BlockSpec((1, tn), lambda j, k: (0, j)),    # beta  (K-resident)
            ],
            out_specs=pl.BlockSpec((n, tn), lambda j, k: (0, j)),
            scratch_shapes=[pltpu.VMEM((n, tn), jnp.float32)],
        ),
        compiler_params=pltpu.CompilerParams(
            dimension_semantics=("parallel", "arbitrary"),
        ),
    )(x_p, w_p, g_p, b_p)

    return out_padded[:, :out_dim]


if __name__ == "__main__":
    # Small shapes consistent with the module: batch=8, in_dim=32, out_dim=16
    N, IN_DIM, OUT_DIM = 8, 32, 16

    key = jax.random.PRNGKey(0)
    kx, kw, kb = jax.random.split(key, 3)

    x = jax.random.normal(kx, (N, IN_DIM), dtype=jnp.float32)

    # Parameter init mimicking nn.Linear's uniform(-1/sqrt(in), 1/sqrt(in))
    bound = 1.0 / (IN_DIM ** 0.5)
    weight = jax.random.uniform(kw, (OUT_DIM, IN_DIM), jnp.float32, -bound, bound)
    bias = jax.random.uniform(kb, (OUT_DIM,), jnp.float32, -bound, bound)
    # BatchNorm1d affine params: weight=1, bias=0 (PyTorch default init)
    gamma = jnp.ones((OUT_DIM,), jnp.float32)
    beta = jnp.zeros((OUT_DIM,), jnp.float32)

    out = fc_relu(x, weight, bias, gamma, beta)
    jax.block_until_ready(out)

    # Reference: full PyTorch-style math (including the Linear bias, which the
    # kernel deliberately drops because BN's mean subtraction cancels it).
    y_ref = x @ weight.T + bias
    mu = y_ref.mean(0, keepdims=True)
    var = ((y_ref - mu) ** 2).mean(0, keepdims=True)
    ref = jnp.maximum((y_ref - mu) / jnp.sqrt(var + EPS) * gamma + beta, 0.0)

    assert out.shape == (N, OUT_DIM)
    assert jnp.allclose(out, ref, atol=1e-4, rtol=1e-5), float(
        jnp.max(jnp.abs(out - ref))
    )

    print("KERNEL_OK")
</pallas_src>

<mosaic_0001>
module attributes {stable_mosaic.version = 11 : i64} {
  func.func @fcrelu_kernel(%arg0: i32, %arg1: i32, %arg2: memref<8x128xf32, #tpu.memory_space<vmem>>, %arg3: memref<128x128xf32, #tpu.memory_space<vmem>>, %arg4: memref<1x128xf32, #tpu.memory_space<vmem>>, %arg5: memref<1x128xf32, #tpu.memory_space<vmem>>, %arg6: memref<8x128xf32, #tpu.memory_space<vmem>>, %arg7: memref<8x128xf32, #tpu.memory_space<vmem>>) attributes {dimension_semantics = [#tpu.dimension_semantics<parallel>, #tpu.dimension_semantics<arbitrary>], iteration_bounds = array<i64: 1, 1>, scalar_prefetch = 0 : i64, scratch_operands = 1 : i64, tpu.core_type = #tpu.core_type<tc>, window_params = [{transform_indices = @transform_0, window_bounds = array<i64: 8, 128>}, {transform_indices = @transform_1, window_bounds = array<i64: 128, 128>}, {transform_indices = @transform_2, window_bounds = array<i64: 1, 128>}, {transform_indices = @transform_3, window_bounds = array<i64: 1, 128>}, {transform_indices = @transform_4, window_bounds = array<i64: 8, 128>}]} {
    %c0_i32 = arith.constant 0 : i32
    %0 = arith.cmpi eq, %arg1, %c0_i32 : i32
    %1 = arith.extui %0 : i1 to i32
    %c0_i32_0 = arith.constant 0 : i32
    %2 = arith.cmpi ne, %1, %c0_i32_0 : i32
    scf.if %2 {
      %cst_10 = arith.constant 0.000000e+00 : f32
      %12 = vector.broadcast %cst_10 : f32 to vector<8x128xf32>
      %c0_11 = arith.constant 0 : index
      %c0_12 = arith.constant 0 : index
      %13 = vector.load %arg7[%c0_11, %c0_12] : memref<8x128xf32, #tpu.memory_space<vmem>>, vector<8x128xf32>
      tpu.vector_store %arg7[%c0_11, %c0_12], %12 {strides = array<i32>} : memref<8x128xf32, #tpu.memory_space<vmem>>, vector<8x128xf32>,
    } else {
    }
    %c0 = arith.constant 0 : index
    %c0_1 = arith.constant 0 : index
    %3 = vector.load %arg7[%c0, %c0_1] : memref<8x128xf32, #tpu.memory_space<vmem>>, vector<8x128xf32>
    %c0_2 = arith.constant 0 : index
    %c0_3 = arith.constant 0 : index
    %4 = vector.load %arg2[%c0_2, %c0_3] : memref<8x128xf32, #tpu.memory_space<vmem>>, vector<8x128xf32>
    %c0_4 = arith.constant 0 : index
    %c0_5 = arith.constant 0 : index
    %5 = vector.load %arg3[%c0_4, %c0_5] : memref<128x128xf32, #tpu.memory_space<vmem>>, vector<128x128xf32>
    %cst = arith.constant dense<0.000000e+00> : vector<8x128xf32>
    %6 = tpu.matmul %4, %5, %cst {dimension_numbers = #tpu.dot_dimension_numbers<[1], [1], [0], [0], [0, 0, 1, 0], [], []>} : vector<8x128xf32>, vector<128x128xf32>, vector<8x128xf32> -> vector<8x128xf32>
    %7 = arith.addf %3, %6 : vector<8x128xf32>
    %c0_6 = arith.constant 0 : index
    %c0_7 = arith.constant 0 : index
    %8 = vector.load %arg7[%c0_6, %c0_7] : memref<8x128xf32, #tpu.memory_space<vmem>>, vector<8x128xf32>
    tpu.vector_store %arg7[%c0_6, %c0_7], %7 {strides = array<i32>} : memref<8x128xf32, #tpu.memory_space<vmem>>, vector<8x128xf32>,
    %c0_i32_8 = arith.constant 0 : i32
    %9 = arith.cmpi eq, %arg1, %c0_i32_8 : i32
    %10 = arith.extui %9 : i1 to i32
    %c0_i32_9 = arith.constant 0 : i32
    %11 = arith.cmpi ne, %10, %c0_i32_9 : i32
    scf.if %11 {
      %c0_10 = arith.constant 0 : index
      %c0_11 = arith.constant 0 : index
      %12 = vector.load %arg7[%c0_10, %c0_11] : memref<8x128xf32, #tpu.memory_space<vmem>>, vector<8x128xf32>
      %cst_12 = arith.constant dense<0.000000e+00> : vector<128xf32>
      %13 = vector.multi_reduction <add>, %12, %cst_12 [0] : vector<8x128xf32> to vector<128xf32>
      %14 = vector.shape_cast %13 : vector<128xf32> to vector<1x128xf32>
      %cst_13 = arith.constant 1.250000e-01 : f32
      %15 = vector.broadcast %cst_13 : f32 to vector<1x128xf32>
      %16 = arith.mulf %14, %15 : vector<1x128xf32>
      %17 = vector.broadcast %16 : vector<1x128xf32> to vector<8x128xf32>
      %18 = arith.subf %12, %17 : vector<8x128xf32>
      %19 = arith.mulf %18, %18 : vector<8x128xf32>
      %cst_14 = arith.constant dense<0.000000e+00> : vector<128xf32>
      %20 = vector.multi_reduction <add>, %19, %cst_14 [0] : vector<8x128xf32> to vector<128xf32>
      %21 = vector.shape_cast %20 : vector<128xf32> to vector<1x128xf32>
      %cst_15 = arith.constant 1.250000e-01 : f32
      %22 = vector.broadcast %cst_15 : f32 to vector<1x128xf32>
      %23 = arith.mulf %21, %22 : vector<1x128xf32>
      %c0_16 = arith.constant 0 : index
      %c0_17 = arith.constant 0 : index
      %24 = vector.load %arg4[%c0_16, %c0_17] : memref<1x128xf32, #tpu.memory_space<vmem>>, vector<1x128xf32>
      %cst_18 = arith.constant 9.99999974E-6 : f32
      %25 = vector.broadcast %cst_18 : f32 to vector<1x128xf32>
      %26 = arith.addf %23, %25 : vector<1x128xf32>
      %27 = math.rsqrt %26 : vector<1x128xf32>
      %28 = arith.mulf %24, %27 : vector<1x128xf32>
      %29 = vector.broadcast %28 : vector<1x128xf32> to vector<8x128xf32>
      %30 = arith.mulf %18, %29 : vector<8x128xf32>
      %c0_19 = arith.constant 0 : index
      %c0_20 = arith.constant 0 : index
      %31 = vector.load %arg5[%c0_19, %c0_20] : memref<1x128xf32, #tpu.memory_space<vmem>>, vector<1x128xf32>
      %32 = vector.broadcast %31 : vector<1x128xf32> to vector<8x128xf32>
      %33 = arith.addf %30, %32 : vector<8x128xf32>
      %cst_21 = arith.constant 0.000000e+00 : f32
      %34 = vector.broadcast %cst_21 : f32 to vector<8x128xf32>
      %35 = arith.maximumf %33, %34 : vector<8x128xf32>
      %c0_22 = arith.constant 0 : index
      %c0_23 = arith.constant 0 : index
      %36 = vector.load %arg6[%c0_22, %c0_23] : memref<8x128xf32, #tpu.memory_space<vmem>>, vector<8x128xf32>
      tpu.vector_store %arg6[%c0_22, %c0_23], %35 {strides = array<i32>} : memref<8x128xf32, #tpu.memory_space<vmem>>, vector<8x128xf32>,
    } else {
    }
    return
  }
  func.func @transform_0(%arg0: i32, %arg1: i32) -> (i32, i32) {
    %c0_i32 = arith.constant 0 : i32
    %c0_i32_0 = arith.constant 0 : i32
    return %c0_i32, %arg1 : i32, i32
  }
  func.func @transform_1(%arg0: i32, %arg1: i32) -> (i32, i32) {
    %c0_i32 = arith.constant 0 : i32
    return %arg0, %arg1 : i32, i32
  }
  func.func @transform_2(%arg0: i32, %arg1: i32) -> (i32, i32) {
    %c0_i32 = arith.constant 0 : i32
    %c0_i32_0 = arith.constant 0 : i32
    return %c0_i32, %arg0 : i32, i32
  }
  func.func @transform_3(%arg0: i32, %arg1: i32) -> (i32, i32) {
    %c0_i32 = arith.constant 0 : i32
    %c0_i32_0 = arith.constant 0 : i32
    return %c0_i32, %arg0 : i32, i32
  }
  func.func @transform_4(%arg0: i32, %arg1: i32) -> (i32, i32) {
    %c0_i32 = arith.constant 0 : i32
    %c0_i32_0 = arith.constant 0 : i32
    return %c0_i32, %arg0 : i32, i32
  }
}

</mosaic_0001>

<bundles_post_ra>
// kernel: tpu_custom_call.1
= control target key start
LH: loop header
LB: loop body
LE: loop exit
PB: predicated region body
PF: predicated region fallthrough
CT: control target
= control target key end

     0   :  { %9 = vsyncpa [#allocation4], 0  ;;  %s371_s0 = inlined_call_operand.hbm [shape: f32[8,128], index: 0, kind: input, shape index: {}]   ;;  %s372_s1 = inlined_call_operand.hbm [shape: f32[128,128], index: 1, kind: input, shape index: {}]   ;;  %s373_s2 = inlined_call_operand.vmem [shape: f32[1,128], index: 2, kind: input, shape index: {}]   ;;  %s374_s3 = inlined_call_operand.vmem [shape: f32[1,128], index: 3, kind: input, shape index: {}]   ;;  %s375_s4 = inlined_call_operand.hbm [shape: f32[8,128], index: 4, kind: output, shape index: {}]  }
   0x1   :  { %10 = vsyncpa [#allocation7], 0 }
   0x2   :  { %11 = vsyncpa [#allocation5], 0  ;;  %s324_s15 = smov [#allocation3]   ;;  %s325_s17 = smov [#allocation6]  }
   0x3   :  { %s18_s16 = sshll.u32 %s324_s15, 4  ;;  %s27_s18 = sshll.u32 %s325_s17, 4  ;;  %s19_s16 = int_to_ptr.vmem [resolvable:$true] %s18_s16  ;;  %s28_s18 = int_to_ptr.vmem [resolvable:$true] %s27_s18 }
   0x4   :  { %s266_s19 = scalar_lea.vmem %s19_s16, 128  ;;  %p271_p1 = scmp.lt.s32.totalorder %s19_s16, %s19_s16 }
   0x5   :  { %p267_p0 = scmp.ne.s32.totalorder %s19_s16, %s266_s19  ;;  %p272_p2 = scmp.lt.s32.totalorder %s266_s19, %s266_s19 }
   0x7   :  { %p273_p3 = por %p272_p2, %p271_p1 }
   0x9   :  { %p274_p4 = pnand %p273_p3, %p267_p0 }
   0xb   :  { %277 = shalt.err (!%p274_p4)
}
   0xc   :  { %21 = dma.hbm_to_vmem [thread:$0]  %s371_s0, 128, %s19_s16, [#allocation4]  }
   0xd   :  { %s286_s22 = scalar_lea.vmem %s28_s18, 2048  ;;  %p291_p6 = scmp.lt.s32.totalorder %s28_s18, %s28_s18 }
   0xe   :  { %p287_p5 = scmp.ne.s32.totalorder %s28_s18, %s286_s22  ;;  %p292_p7 = scmp.lt.s32.totalorder %s286_s22, %s286_s22 }
  0x10   :  { %p293_p8 = por %p292_p7, %p291_p6 }
  0x12   :  { %p294_p9 = pnand %p293_p8, %p287_p5 }
  0x14   :  { %297 = shalt.err (!%p294_p9)
}
  0x15   :  { %s326_s23 = smov 128   ;;  %s327_s24 = smov 8  }
  0x16   :  { %33 = dma.hbm_to_vmem [thread:$0]  %s372_s1, 2048, %s28_s18, [#allocation7], %s326_s23, %s326_s23, %s327_s24  }
  0x17   :  { %318 = dma.done.wait [#allocation4], 128  }
  0x18   :  { %319 = vsyncadd [#allocation4], 4294967168 }
  0x19   :  { %320 = dma.done.wait [#allocation7], 2048  }
  0x1a   :  { %321 = vsyncadd [#allocation7], 4294965248  ;;  %v328_v0 = vmov 0.0   ;;  %vm329_vm0 = vmmov 0   ;;  %v66_v1 = vld [vmem:[#allocation6 + $0x78] sm:$0xff]  ;;  %v65_v2 = vld [vmem:[#allocation6 + $0x70] sm:$0xff]  ;;  %v164_v37 = vlaneseq }
  0x1b   :  { %214 = vmatprep.subr.mxu0 %v328_v0  ;;  %246 = vmatprep.mubr.msk.f32.mxu0 %vm329_vm0, %v328_v0  ;;  %v64_v3 = vld [vmem:[#allocation6 + $0x68] sm:$0xff]  ;;  %v63_v4 = vld [vmem:[#allocation6 + $0x60] sm:$0xff]  ;;  %v62_v5 = vld [vmem:[#allocation6 + $0x58] sm:$0xff]  ;;  %s330_s29 = smov [#allocation8]  }
  0x1c   :  { %215 = vmatpush3.xpose.msra.mxu0 %v66_v1  ;;  %v61_v6 = vld [vmem:[#allocation6 + $0x50] sm:$0xff]  ;;  %v60_v7 = vld [vmem:[#allocation6 + $0x48] sm:$0xff]  ;;  %v59_v8 = vld [vmem:[#allocation6 + $0x40] sm:$0xff]  ;;  %v165_v38 = vshrl.u32 %v164_v37, 7  ;;  %s186_s30 = sshll.u32 %s330_s29, 4  ;;  %s187_s30 = int_to_ptr.vmem [resolvable:$true] %s186_s30 }
  0x1d   :  { %216 = vmatprep.subr.mxu0 %v328_v0  ;;  %v58_v9 = vld [vmem:[#allocation6 + $0x38] sm:$0xff]  ;;  %v57_v10 = vld [vmem:[#allocation6 + $0x30] sm:$0xff]  ;;  %v56_v11 = vld [vmem:[#allocation6 + $0x28] sm:$0xff]  ;;  %s298_s5 = scalar_lea.vmem %s187_s30, 128  ;;  %p303_p11 = scmp.lt.s32.totalorder %s187_s30, %s187_s30 }
  0x1e   :  { %v55_v12 = vld [vmem:[#allocation6 + $0x20] sm:$0xff]  ;;  %v54_v13 = vld [vmem:[#allocation6 + $0x18] sm:$0xff]  ;;  %v53_v14 = vld [vmem:[#allocation6 + $0x10] sm:$0xff]  ;;  %v166_v40 = vsub.s32 0, %v165_v38  ;;  %p299_p10 = scmp.ne.s32.totalorder %s187_s30, %s298_s5  ;;  %p304_p12 = scmp.lt.s32.totalorder %s298_s5, %s298_s5 }
  0x1f   :  { %v52_v15 = vld [vmem:[#allocation6 + $0x8] sm:$0xff]  ;;  %v51_v16 = vld [vmem:[#allocation6] sm:$0xff]  ;;  %v50_v17 = vld [vmem:[#allocation3] sm:$0xff] }
  0x20   :  { %217 = vmatpush3.xpose.msra.mxu0 %v65_v2  ;;  %v159_v39 = vld [vmem:[%s373_s2] sm:$0x1]  ;;  %p305_p13 = por %p304_p12, %p303_p11 }
  0x21   :  { %218 = vmatprep.subr.mxu0 %v328_v0  ;;  %v196_v44 = vld [vmem:[%s374_s3] ss:$0 sm:$0xff] }
  0x22   :  { %p306_p0 = pnand %p305_p13, %p299_p10 }
  0x24   :  { %219 = vmatpush3.xpose.msra.mxu0 %v64_v3 }
  0x25   :  { %220 = vmatprep.subr.mxu0 %v328_v0 }
  0x28   :  { %221 = vmatpush3.xpose.msra.mxu0 %v63_v4 }
  0x29   :  { %222 = vmatprep.subr.mxu0 %v328_v0 }
  0x2c   :  { %223 = vmatpush3.xpose.msra.mxu0 %v62_v5 }
  0x2d   :  { %224 = vmatprep.subr.mxu0 %v328_v0 }
  0x30   :  { %225 = vmatpush3.xpose.msra.mxu0 %v61_v6 }
  0x31   :  { %226 = vmatprep.subr.mxu0 %v328_v0 }
  0x34   :  { %227 = vmatpush3.xpose.msra.mxu0 %v60_v7 }
  0x35   :  { %228 = vmatprep.subr.mxu0 %v328_v0 }
  0x38   :  { %229 = vmatpush3.xpose.msra.mxu0 %v59_v8 }
  0x39   :  { %230 = vmatprep.subr.mxu0 %v328_v0 }
  0x3c   :  { %231 = vmatpush3.xpose.msra.mxu0 %v58_v9 }
  0x3d   :  { %232 = vmatprep.subr.mxu0 %v328_v0 }
  0x40   :  { %233 = vmatpush3.xpose.msra.mxu0 %v57_v10 }
  0x41   :  { %234 = vmatprep.subr.mxu0 %v328_v0 }
  0x44   :  { %235 = vmatpush3.xpose.msra.mxu0 %v56_v11 }
  0x45   :  { %236 = vmatprep.subr.mxu0 %v328_v0 }
  0x48   :  { %237 = vmatpush3.xpose.msra.mxu0 %v55_v12 }
  0x49   :  { %238 = vmatprep.subr.mxu0 %v328_v0 }
  0x4c   :  { %239 = vmatpush3.xpose.msra.mxu0 %v54_v13 }
  0x4d   :  { %240 = vmatprep.subr.mxu0 %v328_v0 }
  0x50   :  { %241 = vmatpush3.xpose.msra.mxu0 %v53_v14 }
  0x51   :  { %242 = vmatprep.subr.mxu0 %v328_v0 }
  0x54   :  { %243 = vmatpush3.xpose.msra.mxu0 %v52_v15 }
  0x55   :  { %244 = vmatprep.subr.mxu0 %v328_v0 }
  0x58   :  { %245 = vmatpush3.xpose.msra.mxu0 %v51_v16 }
  0x5b   :  { %247 = vmatmul.mubr.f32.vlgmr.msra.gmra.mxu0 %v50_v17 }
 0x11b   :  { %v133_v18 = vpop.f32.mrf.mxu0 }
 0x11c   :  { %v143_v19 = vrot.slane %v133_v18, 4 }
 0x11d   :  { %v248_v20 = vpop.f32.mrf.mxu0 }
 0x11e   :  { %v144_v21 = vadd.f32 %v143_v19, %v133_v18 }
 0x120   :  { %v145_v22 = vrot.slane %v144_v21, 2 }
 0x122   :  { %v146_v23 = vadd.f32 %v145_v22, %v144_v21 }
 0x124   :  { %v147_v24 = vrot.slane %v146_v23, 1 }
 0x126   :  { %v148_v25 = vadd.f32 %v147_v24, %v146_v23 }
 0x128   :  { %v149_v26 = vmul.f32 0.125, %v148_v25 }
 0x12a   :  { %v150_v27 = vsub.f32 %v133_v18, %v149_v26 }
 0x12c   :  { %v151_v28 = vmul.f32 %v150_v27, %v150_v27 }
 0x12e   :  { %v152_v29 = vrot.slane %v151_v28, 4 }
 0x130   :  { %v153_v30 = vadd.f32 %v152_v29, %v151_v28 }
 0x132   :  { %v154_v31 = vrot.slane %v153_v30, 2 }
 0x134   :  { %v155_v32 = vadd.f32 %v154_v31, %v153_v30 }
 0x136   :  { %v156_v33 = vrot.slane %v155_v32, 1 }
 0x138   :  { %v157_v34 = vadd.f32 %v156_v33, %v155_v32 }
 0x13a   :  { %v158_v35 = vmul.f32 0.125, %v157_v34 }
 0x13c   :  { %v160_v36 = vadd.f32 1e-05, %v158_v35 }
 0x13e   :  { %256 = vrsqrt.f32 %v160_v36 }
 0x14b   :  { %v257_v41 = vpop.eup %256 }
 0x14c   :  { %v162_v42 = vmul.f32 %v257_v41, %v159_v39 }
 0x14e   :  { %v167_v43 = vrot.slane %v162_v42, %v166_v40 }
 0x150   :  { %v169_v45 = vmul.f32 %v167_v43, %v150_v27 }
 0x152   :  { %v177_v46 = vadd.f32 %v196_v44, %v169_v45 }
 0x154   :  { %v178_v47 = vmax.f32 %v177_v46, 0.0 }
 0x156   :  { %179 = vst [vmem:[#allocation8] sm:$0xff] %v178_v47 }
 0x157   :  { %309 = shalt.err (!%p306_p0)
}
 0x158   :  { %189 = dma.vmem_to_hbm [thread:$0]  %s187_s30, 128, %s375_s4, [#allocation5]  }
 0x159   :  { %322 = dma.done.wait [#allocation5], 128  }
 0x15a   :  { %323 = vsyncadd [#allocation5], 4294967168 }
 0x15b   :  { %193 = vsyncpa [#allocation4], 1 }
 0x15c   :  { %194 = vsyncpa [#allocation7], 1 }
 0x15d   :  { %195 = vsyncpa [#allocation5], 1 }

</bundles_post_ra>
